<compile_context>
chip_gen: v7x
topology: tpu7x:2x2x1
jax: 0.10.0
libtpu: 0.0.40
codegen_flags: <defaults>
</compile_context>

<pallas_src>
import math

import jax
import jax.numpy as jnp
from jax import lax
from jax.experimental import pallas as pl
from jax.experimental.pallas import tpu as pltpu


def _cat_onehot_encoder_kernel(vt_ref, g_ref, b_ref, o_ref):
    """Broadcast-fill one batch tile with the (1, W) weight-normed row.

    vt : (n_labels, W) v^T, pre-tiled k times along lanes (W = k * output_size).
    g  : (1, W) weight_norm magnitude, pre-tiled.
    b  : (1, W) bias, pre-tiled.
    o  : (tb, W) output tile (lane-dense W, multiple of 128 when packing applies).
    """
    vt = vt_ref[...].astype(jnp.float32)                  # (L, W)
    # Label reduction over sublanes (XLU) -> lane-dense (1, W) results.
    ssq = jnp.sum(vt * vt, axis=0, keepdims=True)         # ||v_row||^2 per output
    s = jnp.sum(vt, axis=0, keepdims=True)                # sum_l v[o, l]
    # ones @ W.T per column: g * sum(v) * rsqrt(sum(v^2)) + bias.
    # rsqrt -> EUP slot (free alongside the store DMA).  No eps on purpose: an
    # all-zero v row yields inf/NaN, matching PyTorch weight_norm.
    row = g_ref[...] * s * lax.rsqrt(ssq) + b_ref[...]    # (1, W)
    # Broadcast-store the identical row across this batch tile.
    o_ref[...] = jnp.broadcast_to(row.astype(o_ref.dtype), o_ref.shape)


def categorical_onehot_encoder(
    src,
    v,
    g,
    bias,
    *,
    out_dtype=jnp.float32,
    target_tile_bytes=4 * 1024 * 1024,
    min_pallas_rows=8,
):
    """Forward pass of CategoricalOneHotEncoder.

    src : integer array of shape (B, F); only its shape is used (the PyTorch
          module builds an all-ones (B, n_labels) input, and the
          `inp[:, src.size(1)] = 1.0` write is a no-op on ones).
    v   : (output_size, n_labels) weight_norm direction.
    g   : (output_size,) or (output_size, 1) weight_norm magnitude.
    bias: (output_size,) Linear bias.
    out_dtype : output dtype; jnp.bfloat16 halves the HBM writeback (the whole
          kernel cost) when the consumer tolerates it.  Default float32 matches
          the PyTorch module.
    Returns (B, output_size) out_dtype.
    """
    B = src.shape[0]
    output_size, n_labels = v.shape
    assert src.shape[1] < n_labels, "src.size(1) must index into n_labels"

    v32 = jnp.asarray(v, jnp.float32)
    g32 = jnp.asarray(g, jnp.float32).reshape(-1)
    b32 = jnp.asarray(bias, jnp.float32).reshape(-1)

    # Tiny-batch fast path: pallas_call launch + pipeline setup exceeds the work
    # for sub-sublane batches; emit the row + broadcast in plain JAX.
    if B < min_pallas_rows:
        row = g32 * jnp.sum(v32, axis=1) * lax.rsqrt(jnp.sum(v32 * v32, axis=1)) + b32
        return jnp.broadcast_to(row[None, :].astype(out_dtype), (B, output_size))

    # Lane-dense packing: view (B, O) as (B // k, k*O) with k*O a multiple of
    # 128 so the output store is unmasked full-lane vst.  Falls back to the
    # natural layout if B is not divisible by k.
    if output_size % 128 == 0:
        k = 1
    else:
        k = 128 // math.gcd(output_size, 128)
        if k > B or B % k != 0:
            k = 1
    Bp = B // k
    W = k * output_size

    # One-time layout glue (tiny): transpose v so the label reduction is over
    # sublanes, and pre-tile k lane-copies of the params so the kernel needs no
    # in-kernel tile/reshape.  Redundant per-lane-group compute is free (VPU
    # lockstep, hidden under the store DMA).
    vt = jnp.tile(v32.T, (1, k))                      # (L, W)
    g_row = jnp.tile(g32.reshape(1, -1), (1, k))      # (1, W)
    b_row = jnp.tile(b32.reshape(1, -1), (1, k))      # (1, W)

    # Byte-sized batch tiles: ~target_tile_bytes per output tile, 8-row aligned.
    # Double-buffered output (2 * tile) + resident params stay well under the
    # 32 MiB limit requested below (<= physical VMEM on v5e/v6e/v7x).
    itemsize = jnp.dtype(out_dtype).itemsize
    rows_for_target = max(1, target_tile_bytes // (W * itemsize))
    tb = min(Bp, max(8, (rows_for_target // 8) * 8))
    grid = (pl.cdiv(Bp, tb),)
    # TODO(synk): for very large n_labels*output_size the block-invariant vt
    # residency should itself be tiled; irrelevant at these parameter sizes.

    out_packed = pl.pallas_call(
        _cat_onehot_encoder_kernel,
        out_shape=jax.ShapeDtypeStruct((Bp, W), out_dtype),
        grid=grid,
        in_specs=[
            # Parameters are tiny and block-invariant across the grid: same
            # block index every step -> stay VMEM-resident, no re-DMA.
            pl.BlockSpec((n_labels, W), lambda i: (0, 0)),
            pl.BlockSpec((1, W), lambda i: (0, 0)),
            pl.BlockSpec((1, W), lambda i: (0, 0)),
        ],
        out_specs=pl.BlockSpec((tb, W), lambda i: (i, 0)),
        compiler_params=pltpu.CompilerParams(
            # Independent output tiles -> megacore sharding on v7x's 2 TCs.
            dimension_semantics=("parallel",),
            # Explicit budget with headroom; <= physical VMEM on all generations.
            vmem_limit_bytes=32 * 1024 * 1024,
        ),
    )(vt, g_row, b_row)

    # (Bp, k*O) -> (B, O): contiguous row-major reshape, no data movement.
    return out_packed.reshape(B, output_size)


if __name__ == "__main__":
    key = jax.random.PRNGKey(0)
    k_src, k_v, k_g, k_b = jax.random.split(key, 4)

    # Small shapes consistent with the module's forward.
    n_feat = 4          # src.size(1); must be < n_labels
    n_labels = 16
    output_size = 32

    # Deterministic synthetic parameters (weight_norm: v direction, g magnitude, bias).
    v = jax.random.normal(k_v, (output_size, n_labels), dtype=jnp.float32) * 0.1
    g = jax.random.normal(k_g, (output_size,), dtype=jnp.float32) * 0.5 + 1.0
    bias = jax.random.normal(k_b, (output_size,), dtype=jnp.float32) * 0.01

    # Reference in plain JAX (original, un-simplified math).
    w_ref = v * (g[:, None] / jnp.sqrt(jnp.sum(v * v, axis=1, keepdims=True)))

    def reference(batch):
        return jnp.ones((batch, n_labels), jnp.float32) @ w_ref.T + bias[None, :]

    # Cases: tiny-B plain-JAX fallback; lane-packed single-tile Pallas path;
    # multi-tile grid with a partial last tile; batch not divisible by the
    # packing factor (natural-layout Pallas path).
    cases = [
        (2, {}),
        (256, {}),
        (200, {"target_tile_bytes": 8 * 128 * 4}),
        (10, {}),
    ]
    for batch, kw in cases:
        src = jax.random.randint(k_src, (batch, n_feat), 0, n_labels, dtype=jnp.int32)
        out = jax.block_until_ready(categorical_onehot_encoder(src, v, g, bias, **kw))
        assert out.shape == (batch, output_size)
        assert jnp.allclose(out, reference(batch), atol=1e-5, rtol=1e-5), f"mismatch at B={batch}"

    print("KERNEL_OK")
</pallas_src>

<mosaic_0001>
module attributes {stable_mosaic.version = 11 : i64} {
  func.func @_cat_onehot_encoder_kernel(%arg0: i32, %arg1: memref<16x128xf32, #tpu.memory_space<vmem>>, %arg2: memref<1x128xf32, #tpu.memory_space<vmem>>, %arg3: memref<1x128xf32, #tpu.memory_space<vmem>>, %arg4: memref<64x128xf32, #tpu.memory_space<vmem>>) attributes {dimension_semantics = [#tpu.dimension_semantics<parallel>], iteration_bounds = array<i64: 1>, scalar_prefetch = 0 : i64, scratch_operands = 0 : i64, tpu.core_type = #tpu.core_type<tc>, window_params = [{pipeline_mode = #tpu.pipeline_mode<synchronous>, transform_indices = @transform_0, window_bounds = array<i64: 16, 128>}, {pipeline_mode = #tpu.pipeline_mode<synchronous>, transform_indices = @transform_1, window_bounds = array<i64: 1, 128>}, {pipeline_mode = #tpu.pipeline_mode<synchronous>, transform_indices = @transform_2, window_bounds = array<i64: 1, 128>}, {transform_indices = @transform_3, window_bounds = array<i64: 64, 128>}]} {
    %c0 = arith.constant 0 : index
    %c0_0 = arith.constant 0 : index
    %0 = vector.load %arg1[%c0, %c0_0] : memref<16x128xf32, #tpu.memory_space<vmem>>, vector<16x128xf32>
    %1 = arith.mulf %0, %0 : vector<16x128xf32>
    %cst = arith.constant dense<0.000000e+00> : vector<128xf32>
    %2 = vector.multi_reduction <add>, %1, %cst [0] : vector<16x128xf32> to vector<128xf32>
    %3 = vector.shape_cast %2 : vector<128xf32> to vector<1x128xf32>
    %cst_1 = arith.constant dense<0.000000e+00> : vector<128xf32>
    %4 = vector.multi_reduction <add>, %0, %cst_1 [0] : vector<16x128xf32> to vector<128xf32>
    %5 = vector.shape_cast %4 : vector<128xf32> to vector<1x128xf32>
    %c0_2 = arith.constant 0 : index
    %c0_3 = arith.constant 0 : index
    %6 = vector.load %arg2[%c0_2, %c0_3] : memref<1x128xf32, #tpu.memory_space<vmem>>, vector<1x128xf32>
    %7 = arith.mulf %6, %5 : vector<1x128xf32>
    %8 = math.rsqrt %3 : vector<1x128xf32>
    %9 = arith.mulf %7, %8 : vector<1x128xf32>
    %c0_4 = arith.constant 0 : index
    %c0_5 = arith.constant 0 : index
    %10 = vector.load %arg3[%c0_4, %c0_5] : memref<1x128xf32, #tpu.memory_space<vmem>>, vector<1x128xf32>
    %11 = arith.addf %9, %10 : vector<1x128xf32>
    %12 = vector.shape_cast %11 : vector<1x128xf32> to vector<1x128xf32>
    %13 = vector.broadcast %12 : vector<1x128xf32> to vector<64x128xf32>
    %c0_6 = arith.constant 0 : index
    %c0_7 = arith.constant 0 : index
    %14 = vector.load %arg4[%c0_6, %c0_7] : memref<64x128xf32, #tpu.memory_space<vmem>>, vector<64x128xf32>
    tpu.vector_store %arg4[%c0_6, %c0_7], %13 {strides = array<i32>} : memref<64x128xf32, #tpu.memory_space<vmem>>, vector<64x128xf32>,
    return
  }
  func.func @transform_0(%arg0: i32) -> (i32, i32) {
    %c0_i32 = arith.constant 0 : i32
    %c0_i32_0 = arith.constant 0 : i32
    %c0_i32_1 = arith.constant 0 : i32
    return %c0_i32, %c0_i32_0 : i32, i32
  }
  func.func @transform_1(%arg0: i32) -> (i32, i32) {
    %c0_i32 = arith.constant 0 : i32
    %c0_i32_0 = arith.constant 0 : i32
    %c0_i32_1 = arith.constant 0 : i32
    return %c0_i32, %c0_i32_0 : i32, i32
  }
  func.func @transform_2(%arg0: i32) -> (i32, i32) {
    %c0_i32 = arith.constant 0 : i32
    %c0_i32_0 = arith.constant 0 : i32
    %c0_i32_1 = arith.constant 0 : i32
    return %c0_i32, %c0_i32_0 : i32, i32
  }
  func.func @transform_3(%arg0: i32) -> (i32, i32) {
    %c0_i32 = arith.constant 0 : i32
    %c0_i32_0 = arith.constant 0 : i32
    return %arg0, %c0_i32 : i32, i32
  }
}

</mosaic_0001>

<bundles_post_ra>
// kernel: tpu_custom_call.1
= control target key start
LH: loop header
LB: loop body
LE: loop exit
PB: predicated region body
PF: predicated region fallthrough
CT: control target
= control target key end

     0   :  { %8 = vsyncpa [#allocation3], 0  ;;  %s198_s0 = inlined_call_operand.hbm [shape: f32[16,128], index: 0, kind: input, shape index: {}]   ;;  %s199_s1 = inlined_call_operand.vmem [shape: f32[1,128], index: 1, kind: input, shape index: {}]   ;;  %s200_s2 = inlined_call_operand.vmem [shape: f32[1,128], index: 2, kind: input, shape index: {}]   ;;  %s201_s3 = inlined_call_operand.hbm [shape: f32[64,128], index: 3, kind: output, shape index: {}]  }
   0x1   :  { %9 = vsyncpa [#allocation4], 0  ;;  %s138_s12 = smov [#allocation2]   ;;  %s90_s16 = scalar_lea.hbm %s198_s0, 256 }
   0x2   :  { %s15_s13 = sshll.u32 %s138_s12, 4  ;;  %p91_p0 = scmp.ne.s32.totalorder %s198_s0, %s90_s16  ;;  %s16_s13 = int_to_ptr.vmem [resolvable:$true] %s15_s13 }
   0x3   :  { %p94_p1 = scmp.lt.u32.totalorder %s90_s16, %s198_s0 }
   0x5   :  { %p96_p2 = pnand %p94_p1, %p91_p0 }
   0x7   :  { %99 = shalt.err (!%p96_p2)
}
   0x8   :  { %s100_s21 = scalar_lea.vmem %s16_s13, 256  ;;  %p105_p4 = scmp.lt.s32.totalorder %s16_s13, %s16_s13 }
   0x9   :  { %p101_p3 = scmp.ne.s32.totalorder %s16_s13, %s100_s21  ;;  %p106_p5 = scmp.lt.s32.totalorder %s100_s21, %s100_s21 }
   0xb   :  { %p107_p6 = por %p106_p5, %p105_p4 }
   0xd   :  { %p108_p7 = pnand %p107_p6, %p101_p3 }
   0xf   :  { %111 = shalt.err (!%p108_p7)
}
  0x10   :  { %s139_s22 = smov 128   ;;  %s140_s23 = smov 8  }
  0x11   :  { %21 = dma.hbm_to_vmem [thread:$0]  %s198_s0, 256, %s16_s13, [#allocation3], %s139_s22, %s139_s22, %s140_s23  }
  0x12   :  { %134 = dma.done.wait [#allocation3], 256  }
  0x13   :  { %135 = vsyncadd [#allocation3], 4294967040  ;;  %v29_v0 = vld [vmem:[#allocation2] sm:$0xff]  ;;  %v30_v1 = vld [vmem:[#allocation2 + $0x8] sm:$0xff]  ;;  %v54_v18 = vlaneseq  ;;  %s141_s29 = smov [#allocation5]  }
  0x14   :  { %v31_v2 = vmul.f32 %v29_v0, %v29_v0  ;;  %v32_v3 = vmul.f32 %v30_v1, %v30_v1  ;;  %v40_v4 = vadd.f32 %v30_v1, %v29_v0  ;;  %v47_v19 = vld [vmem:[%s199_s1] sm:$0x1]  ;;  %s72_s30 = sshll.u32 %s141_s29, 4  ;;  %s73_s30 = int_to_ptr.vmem [resolvable:$true] %s72_s30 }
  0x15   :  { %v55_v21 = vshrl.u32 %v54_v18, 7  ;;  %v51_v23 = vld [vmem:[%s200_s2] sm:$0x1]  ;;  %s112_s1 = scalar_lea.vmem %s73_s30, 1024  ;;  %p117_p9 = scmp.lt.s32.totalorder %s73_s30, %s73_s30 }
  0x16   :  { %v33_v5 = vadd.f32 %v32_v3, %v31_v2  ;;  %v41_v6 = vrot.slane %v40_v4, 4  ;;  %p113_p8 = scmp.ne.s32.totalorder %s73_s30, %s112_s1  ;;  %p118_p10 = scmp.lt.s32.totalorder %s112_s1, %s112_s1 }
  0x17   :  { %v56_v25 = vsub.s32 0, %v55_v21 }
  0x18   :  { %v34_v7 = vrot.slane %v33_v5, 4  ;;  %v42_v8 = vadd.f32 %v41_v6, %v40_v4  ;;  %p119_p11 = por %p118_p10, %p117_p9 }
  0x1a   :  { %v35_v9 = vadd.f32 %v34_v7, %v33_v5  ;;  %v43_v10 = vrot.slane %v42_v8, 2  ;;  %p120_p12 = pnand %p119_p11, %p113_p8 }
  0x1c   :  { %v36_v11 = vrot.slane %v35_v9, 2  ;;  %v44_v13 = vadd.f32 %v43_v10, %v42_v8 }
  0x1e   :  { %v37_v12 = vadd.f32 %v36_v11, %v35_v9  ;;  %v45_v16 = vrot.slane %v44_v13, 1 }
  0x20   :  { %v38_v14 = vrot.slane %v37_v12, 1  ;;  %v46_v17 = vadd.f32 %v45_v16, %v44_v13 }
  0x22   :  { %v39_v15 = vadd.f32 %v38_v14, %v37_v12  ;;  %v48_v20 = vmul.f32 %v47_v19, %v46_v17 }
  0x24   :  { %88 = vrsqrt.f32 %v39_v15 }
  0x2e   :  { %v89_v22 = vpop.eup %88 }
  0x2f   :  { %v50_v24 = vmul.f32 %v89_v22, %v48_v20 }
  0x31   :  { %v52_v26 = vadd.f32 %v51_v23, %v50_v24 }
  0x33   :  { %v57_v27 = vrot.slane %v52_v26, %v56_v25 }
  0x35   :  { %59 = vst [vmem:[#allocation5] sm:$0xff] %v57_v27  ;;  %60 = vst [vmem:[#allocation5 + $0x8] sm:$0xff] %v57_v27 }
  0x36   :  { %61 = vst [vmem:[#allocation5 + $0x10] sm:$0xff] %v57_v27  ;;  %62 = vst [vmem:[#allocation5 + $0x18] sm:$0xff] %v57_v27 }
  0x37   :  { %63 = vst [vmem:[#allocation5 + $0x20] sm:$0xff] %v57_v27  ;;  %64 = vst [vmem:[#allocation5 + $0x28] sm:$0xff] %v57_v27 }
  0x38   :  { %65 = vst [vmem:[#allocation5 + $0x30] sm:$0xff] %v57_v27  ;;  %66 = vst [vmem:[#allocation5 + $0x38] sm:$0xff] %v57_v27 }
  0x39   :  { %123 = shalt.err (!%p120_p12)
}
  0x3a   :  { %s124_s5 = scalar_lea.hbm %s201_s3, 1024 }
  0x3b   :  { %p125_p13 = scmp.ne.s32.totalorder %s201_s3, %s124_s5  ;;  %p128_p0 = scmp.lt.u32.totalorder %s124_s5, %s201_s3 }
  0x3d   :  { %p130_p1 = pnand %p128_p0, %p125_p13 }
  0x3f   :  { %133 = shalt.err (!%p130_p1)
}
  0x40   :  { %78 = dma.vmem_to_hbm [thread:$0]  %s73_s30, 1024, %s201_s3, [#allocation4], %s139_s22, %s139_s22, %s140_s23  }
  0x41   :  { %136 = dma.done.wait [#allocation4], 1024  }
  0x42   :  { %137 = vsyncadd [#allocation4], 4294966272 }
  0x43   :  { %82 = vsyncpa [#allocation3], 1 }
  0x44   :  { %83 = vsyncpa [#allocation4], 1 }

</bundles_post_ra>
